<compile_context>
chip_gen: v6e
topology: v6e:2x2x1
jax: 0.10.0
libtpu: 0.0.40
codegen_flags: <defaults>
</compile_context>

<pallas_src>
import math

import jax
import jax.numpy as jnp
from jax.experimental import pallas as pl
from jax.experimental.pallas import tpu as pltpu


def _scale_bias_kernel(x_ref, w_ref, b_ref, o_ref):
    # o = x * w + b. w/b are (1, tile_d) rows broadcast over the batch
    # (sublane) axis of the (tile_b, tile_d) x tile. VPU work only; the
    # kernel is HBM-bandwidth bound so the f32 upcast is free filler.
    x = x_ref[...].astype(jnp.float32)
    w = w_ref[...].astype(jnp.float32)
    b = b_ref[...].astype(jnp.float32)
    o_ref[...] = (x * w + b).astype(o_ref.dtype)


def _round_up(n, m):
    return ((n + m - 1) // m) * m


def _round_down(n, m):
    return (n // m) * m


def _sublane_pack(dtype):
    # Sublane packing: 8 rows for 32-bit, 16 for 16-bit, 32 for 8-bit dtypes.
    return max(8, 32 // jnp.dtype(dtype).itemsize)


_MEGACORE_MIN_BYTES = 2 * 1024 * 1024   # only split batch for megacore above this
_MIN_SPLIT_TILE_BYTES = 1 * 1024 * 1024  # keep >= ~1 MiB per tile when splitting
_MAX_TILE_D = 32768                      # cap lanes per tile in the D-split path


def _tpu_config():
    """Best-effort (num_tensorcores_per_chip, per-array tile byte budget)."""
    num_cores = 1
    tile_bytes = 4 * 1024 * 1024  # safe default for v5e/v6e
    try:
        info = pltpu.get_tpu_info()
        vmem = getattr(info, "vmem_capacity_bytes", None)
        cores = (getattr(info, "num_cores", None)
                 or getattr(info, "num_tensorcores", None)
                 or getattr(info, "tensorcores_per_chip", None))
        if cores is not None:
            num_cores = max(1, int(cores))
        if vmem is not None and int(vmem) <= 64 * 1024 * 1024:
            # v7x-class: 64 MiB VMEM/TC, ~3.2 TB/s HBM, 2 TensorCores/chip.
            tile_bytes = 8 * 1024 * 1024
            num_cores = max(num_cores, 2)
    except Exception:
        pass
    try:
        kind = jax.devices()[0].device_kind.lower()
        if "v7" in kind:
            num_cores = max(num_cores, 2)
            tile_bytes = max(tile_bytes, 8 * 1024 * 1024)
    except Exception:
        pass
    return num_cores, tile_bytes


def _pick_tiles(B, D, itemsize, pack, num_cores, tile_bytes):
    # Prefer keeping all of D in one lane-dense block so the (1, D) params stay
    # resident in VMEM across batch tiles and output stores are unmasked.
    if D * itemsize * pack <= tile_bytes:
        tile_d = D
        full_d = True
    else:
        # Squarer tiles: cap lanes at 32K, let rows grow to fill the budget.
        tile_d = max(128, _round_down(tile_bytes // (itemsize * pack), 128))
        tile_d = min(tile_d, _MAX_TILE_D)
        full_d = False

    tile_b = max(pack, _round_down(tile_bytes // (tile_d * itemsize), pack))

    if (num_cores >= 2
            and B * D * itemsize >= _MEGACORE_MIN_BYTES
            and B >= 2 * num_cores * pack):
        # Give every TensorCore >= 2 grid steps so per-core double buffering
        # has something to pipeline, but keep each tile >= ~1 MiB.
        per_core = _round_up(pl.cdiv(B, 2 * num_cores), pack)
        min_rows = max(
            pack,
            _round_up(pl.cdiv(_MIN_SPLIT_TILE_BYTES, tile_d * itemsize), pack))
        tile_b = min(tile_b, max(per_core, min_rows))

    if tile_b >= B:
        tile_b = B  # single full-extent batch block (tiny-problem fast path)
    return tile_b, tile_d, full_d


def linear_forward(x, weights, biases):
    """x: (..., D); weights, biases: (D,). Returns x * weights + biases."""
    *lead, D = x.shape
    assert weights.shape == (D,) and biases.shape == (D,)

    x2 = x.reshape(-1, D)
    B = x2.shape[0]
    itemsize = jnp.dtype(x2.dtype).itemsize
    pack = _sublane_pack(x2.dtype)

    # Lane folding: if D is small or not a multiple of 128, fold k batch rows
    # into the lane axis (params tiled k times) so output stores are unmasked
    # full-lane vst. Only when k divides B cleanly; otherwise Pallas's masked
    # edge-block handling keeps us correct (just slower on the edge).
    fold = 1
    if D < 128 or D % 128 != 0:
        k = 128 // math.gcd(D, 128)
        if k > 1 and B >= k and B % k == 0:
            fold = k

    if fold > 1:
        x2 = x2.reshape(B // fold, fold * D)
        w1 = jnp.tile(weights, fold)
        b1 = jnp.tile(biases, fold)
    else:
        w1 = weights
        b1 = biases

    Bk, Dk = x2.shape
    num_cores, tile_bytes = _tpu_config()
    tile_b, tile_d, full_d = _pick_tiles(Bk, Dk, itemsize, pack,
                                         num_cores, tile_bytes)

    # (1, Dk) row vectors map onto (sublane=1, lane=Dk); broadcast in-kernel.
    w2 = w1.reshape(1, Dk)
    b2 = b1.reshape(1, Dk)
    param_itemsize = jnp.dtype(w2.dtype).itemsize

    if full_d:
        grid = (pl.cdiv(Bk, tile_b),)
        in_specs = [
            pl.BlockSpec((tile_b, Dk), lambda i: (i, 0)),
            pl.BlockSpec((1, Dk), lambda i: (0, 0)),  # VMEM-resident across batch
            pl.BlockSpec((1, Dk), lambda i: (0, 0)),
        ]
        out_specs = pl.BlockSpec((tile_b, Dk), lambda i: (i, 0))
        dims = ("parallel",)
    else:
        # D tiles on the OUTER (slowest) axis: the (1, tile_d) param blocks
        # keep the same block index across the inner batch sweep, so they are
        # fetched once per D tile instead of once per grid step.
        grid = (pl.cdiv(Dk, tile_d), pl.cdiv(Bk, tile_b))
        in_specs = [
            pl.BlockSpec((tile_b, tile_d), lambda j, i: (i, j)),
            pl.BlockSpec((1, tile_d), lambda j, i: (0, j)),
            pl.BlockSpec((1, tile_d), lambda j, i: (0, j)),
        ]
        out_specs = pl.BlockSpec((tile_b, tile_d), lambda j, i: (i, j))
        dims = ("parallel", "parallel")

    # Double-buffered x + out tiles plus the small param rows and slack;
    # floor at 32 MiB (safe everywhere), cap at 48 MiB for Mosaic scratch
    # headroom under v7x's 64 MiB physical VMEM.
    param_bytes = 2 * tile_d * param_itemsize
    vmem_bytes = 2 * (2 * tile_b * tile_d * itemsize + 2 * param_bytes) + (2 << 20)
    vmem_bytes = int(min(max(vmem_bytes, 32 * 1024 * 1024), 48 * 1024 * 1024))

    cost = pl.CostEstimate(
        flops=2 * Bk * Dk,
        bytes_accessed=2 * Bk * Dk * itemsize + 2 * Dk * param_itemsize,
        transcendentals=0,
    )

    out2 = pl.pallas_call(
        _scale_bias_kernel,
        out_shape=jax.ShapeDtypeStruct((Bk, Dk), x2.dtype),
        grid_spec=pltpu.PrefetchScalarGridSpec(
            num_scalar_prefetch=0,
            grid=grid,
            in_specs=in_specs,
            out_specs=out_specs,
        ),
        compiler_params=pltpu.CompilerParams(
            dimension_semantics=dims,
            vmem_limit_bytes=vmem_bytes,
        ),
        cost_estimate=cost,
    )(x2, w2, b2)

    if fold > 1:
        out2 = out2.reshape(B, D)
    return out2.reshape(*lead, D)


if __name__ == "__main__":
    key = jax.random.PRNGKey(0)
    k_x, k_w, k_b, k_x2, k_x3, k_w3, k_b3 = jax.random.split(key, 7)

    # Small demo shapes consistent with the module: x is (batch, input_dim).
    batch, input_dim = 8, 128
    x = jax.random.normal(k_x, (batch, input_dim), dtype=jnp.float32)
    weights = jax.random.normal(k_w, (input_dim,), dtype=jnp.float32)
    biases = jax.random.normal(k_b, (input_dim,), dtype=jnp.float32)

    out = jax.block_until_ready(linear_forward(x, weights, biases))
    ref = x * weights + biases
    assert jnp.allclose(out, ref, atol=1e-6, rtol=1e-6), "mismatch vs reference"

    # Leading dims + a batch size that is not a multiple of the sublane pack
    # (exercises the full-extent ragged batch block path).
    x_big = jax.random.normal(k_x2, (3, 17, input_dim), dtype=jnp.float32)
    out_big = jax.block_until_ready(linear_forward(x_big, weights, biases))
    ref_big = x_big * weights + biases
    assert jnp.allclose(out_big, ref_big, atol=1e-6, rtol=1e-6), "mismatch (3-D)"

    # Small / non-128 feature dim exercises the lane-folding path
    # (D=32, k=4 -> folded to a lane-dense (2, 128) block).
    small_dim = 32
    x_small = jax.random.normal(k_x3, (8, small_dim), dtype=jnp.float32)
    w_small = jax.random.normal(k_w3, (small_dim,), dtype=jnp.float32)
    b_small = jax.random.normal(k_b3, (small_dim,), dtype=jnp.float32)
    out_small = jax.block_until_ready(linear_forward(x_small, w_small, b_small))
    ref_small = x_small * w_small + b_small
    assert jnp.allclose(out_small, ref_small, atol=1e-6, rtol=1e-6), "mismatch (fold)"

    print("KERNEL_OK")
</pallas_src>

<mosaic_0001>
module attributes {stable_mosaic.version = 11 : i64} {
  func.func @_scale_bias_kernel(%arg0: i32, %arg1: memref<8x128xf32, #tpu.memory_space<vmem>>, %arg2: memref<1x128xf32, #tpu.memory_space<vmem>>, %arg3: memref<1x128xf32, #tpu.memory_space<vmem>>, %arg4: memref<8x128xf32, #tpu.memory_space<vmem>>) attributes {dimension_semantics = [#tpu.dimension_semantics<parallel>], iteration_bounds = array<i64: 1>, scalar_prefetch = 0 : i64, scratch_operands = 0 : i64, tpu.core_type = #tpu.core_type<tc>, window_params = [{transform_indices = @transform_0, window_bounds = array<i64: 8, 128>}, {pipeline_mode = #tpu.pipeline_mode<synchronous>, transform_indices = @transform_1, window_bounds = array<i64: 1, 128>}, {pipeline_mode = #tpu.pipeline_mode<synchronous>, transform_indices = @transform_2, window_bounds = array<i64: 1, 128>}, {transform_indices = @transform_3, window_bounds = array<i64: 8, 128>}]} {
    %c0 = arith.constant 0 : index
    %c0_0 = arith.constant 0 : index
    %0 = vector.load %arg1[%c0, %c0_0] : memref<8x128xf32, #tpu.memory_space<vmem>>, vector<8x128xf32>
    %c0_1 = arith.constant 0 : index
    %c0_2 = arith.constant 0 : index
    %1 = vector.load %arg2[%c0_1, %c0_2] : memref<1x128xf32, #tpu.memory_space<vmem>>, vector<1x128xf32>
    %c0_3 = arith.constant 0 : index
    %c0_4 = arith.constant 0 : index
    %2 = vector.load %arg3[%c0_3, %c0_4] : memref<1x128xf32, #tpu.memory_space<vmem>>, vector<1x128xf32>
    %3 = vector.broadcast %1 : vector<1x128xf32> to vector<8x128xf32>
    %4 = arith.mulf %0, %3 : vector<8x128xf32>
    %5 = vector.broadcast %2 : vector<1x128xf32> to vector<8x128xf32>
    %6 = arith.addf %4, %5 : vector<8x128xf32>
    %c0_5 = arith.constant 0 : index
    %c0_6 = arith.constant 0 : index
    %7 = vector.load %arg4[%c0_5, %c0_6] : memref<8x128xf32, #tpu.memory_space<vmem>>, vector<8x128xf32>
    tpu.vector_store %arg4[%c0_5, %c0_6], %6 {strides = array<i32>} : memref<8x128xf32, #tpu.memory_space<vmem>>, vector<8x128xf32>,
    return
  }
  func.func @transform_0(%arg0: i32) -> (i32, i32) {
    %c0_i32 = arith.constant 0 : i32
    %c0_i32_0 = arith.constant 0 : i32
    return %arg0, %c0_i32 : i32, i32
  }
  func.func @transform_1(%arg0: i32) -> (i32, i32) {
    %c0_i32 = arith.constant 0 : i32
    %c0_i32_0 = arith.constant 0 : i32
    %c0_i32_1 = arith.constant 0 : i32
    return %c0_i32, %c0_i32_0 : i32, i32
  }
  func.func @transform_2(%arg0: i32) -> (i32, i32) {
    %c0_i32 = arith.constant 0 : i32
    %c0_i32_0 = arith.constant 0 : i32
    %c0_i32_1 = arith.constant 0 : i32
    return %c0_i32, %c0_i32_0 : i32, i32
  }
  func.func @transform_3(%arg0: i32) -> (i32, i32) {
    %c0_i32 = arith.constant 0 : i32
    %c0_i32_0 = arith.constant 0 : i32
    return %arg0, %c0_i32 : i32, i32
  }
}

</mosaic_0001>

<bundles_post_ra>
// kernel: tpu_custom_call.1
= control target key start
LH: loop header
LB: loop body
LE: loop exit
PB: predicated region body
PF: predicated region fallthrough
CT: control target
= control target key end

     0   :  { %8 = vsyncpa [#allocation3], 0  ;;  %s142_s0 = inlined_call_operand.hbm [shape: f32[8,128], index: 0, kind: input, shape index: {}]   ;;  %s143_s1 = inlined_call_operand.vmem [shape: f32[1,128], index: 1, kind: input, shape index: {}]   ;;  %s144_s2 = inlined_call_operand.vmem [shape: f32[1,128], index: 2, kind: input, shape index: {}]   ;;  %s145_s3 = inlined_call_operand.hbm [shape: f32[8,128], index: 3, kind: output, shape index: {}]  }
   0x1   :  { %9 = vsyncpa [#allocation4], 0  ;;  %s108_s12 = smov [#allocation2]  }
   0x2   :  { %s16_s13 = sshll.u32 %s108_s12, 4  ;;  %s17_s13 = int_to_ptr.vmem [resolvable:$true] %s16_s13 }
   0x3   :  { %s72_s14 = scalar_lea.vmem %s17_s13, 128  ;;  %p77_p1 = scmp.lt.s32.totalorder %s17_s13, %s17_s13 }
   0x4   :  { %p73_p0 = scmp.ne.s32.totalorder %s17_s13, %s72_s14  ;;  %p78_p2 = scmp.lt.s32.totalorder %s72_s14, %s72_s14 }
   0x6   :  { %p79_p3 = por %p78_p2, %p77_p1 }
   0x8   :  { %p80_p4 = pnand %p79_p3, %p73_p0 }
   0xa   :  { %83 = shalt.err (!%p80_p4)
}
   0xb   :  { %19 = dma.hbm_to_vmem [thread:$0]  %s142_s0, 128, %s17_s13, [#allocation3]  }
   0xc   :  { %104 = dma.done.wait [#allocation3], 128  }
   0xd   :  { %105 = vsyncadd [#allocation3], 4294967168  ;;  %v27_v0 = vld [vmem:[#allocation2] sm:$0xff]  ;;  %s109_s21 = smov [#allocation5]  }
   0xe   :  { %v60_v1 = vld [vmem:[%s143_s1] ss:$0 sm:$0xff]  ;;  %s51_s22 = sshll.u32 %s109_s21, 4  ;;  %s52_s22 = int_to_ptr.vmem [resolvable:$true] %s51_s22 }
   0xf   :  { %v61_v2 = vld [vmem:[%s144_s2] ss:$0 sm:$0xff]  ;;  %v36_v3 = vmul.f32 %v60_v1, %v27_v0  ;;  %s84_s23 = scalar_lea.vmem %s52_s22, 128  ;;  %p89_p6 = scmp.lt.s32.totalorder %s52_s22, %s52_s22 }
  0x10   :  { %p85_p5 = scmp.ne.s32.totalorder %s52_s22, %s84_s23  ;;  %p90_p7 = scmp.lt.s32.totalorder %s84_s23, %s84_s23 }
  0x11   :  { %v43_v4 = vadd.f32 %v61_v2, %v36_v3 }
  0x12   :  { %p91_p8 = por %p90_p7, %p89_p6 }
  0x13   :  { %44 = vst [vmem:[#allocation5] sm:$0xff] %v43_v4 }
  0x14   :  { %p92_p9 = pnand %p91_p8, %p85_p5 }
  0x16   :  { %95 = shalt.err (!%p92_p9)
}
  0x17   :  { %54 = dma.vmem_to_hbm [thread:$0]  %s52_s22, 128, %s145_s3, [#allocation4]  }
  0x18   :  { %106 = dma.done.wait [#allocation4], 128  }
  0x19   :  { %107 = vsyncadd [#allocation4], 4294967168 }
  0x1a   :  { %58 = vsyncpa [#allocation3], 1 }
  0x1b   :  { %59 = vsyncpa [#allocation4], 1 }

</bundles_post_ra>
